<compile_context>
chip_gen: v5e
topology: v5e:2x2
jax: 0.10.0
libtpu: 0.0.40
codegen_flags: <defaults>
</compile_context>

<pallas_src>
import jax
import jax.numpy as jnp
from jax.experimental import pallas as pl
from jax.experimental.pallas import tpu as pltpu

_MIB = 1024 * 1024


def _vmem_capacity_bytes():
    """Physical VMEM per core (128 MiB v5e/v6e, 64 MiB v7x); conservative fallback."""
    try:
        info = pltpu.get_tpu_info()
        for attr in ("vmem_capacity_bytes", "vmem_bytes", "vmem_size_bytes"):
            cap = getattr(info, attr, None)
            if cap:
                return int(cap)
    except Exception:
        pass
    return 64 * _MIB


def _make_kernel(num_chunks, hw_total, tile_hw, out_dtype):
    inv_hw = 1.0 / float(hw_total)
    needs_mask = (hw_total % tile_hw) != 0
    lanes_per_step = tile_hw // 128  # tile_hw is always a multiple of 128

    def kernel(*refs):
        x_refs = refs[:num_chunks]                   # each (TN, C_i, TILE_HW)
        w_refs = refs[num_chunks:2 * num_chunks]     # each (C_i, NC_PAD)
        b_ref = refs[2 * num_chunks]                 # (1, NC_PAD)
        o_ref = refs[2 * num_chunks + 1]             # (TN, NC_PAD)
        acc_refs = refs[2 * num_chunks + 2:]         # each (TN, C_i, 128) f32 scratch

        hw_idx = pl.program_id(1)                    # innermost reduction axis
        last = pl.num_programs(1) - 1

        @pl.when(hw_idx == 0)
        def _init():
            for acc in acc_refs:
                acc[...] = jnp.zeros_like(acc)

        def accumulate(apply_mask):
            # Pure VPU elementwise adds onto a 128-lane f32 slab; no cross-lane
            # (XLU) reduce and no sublane->lane relayout in the hot loop.
            for x_ref, acc in zip(x_refs, acc_refs):
                x = x_ref[...]
                if apply_mask:
                    lane = jax.lax.broadcasted_iota(jnp.int32, (1, 1, tile_hw), 2)
                    valid = (hw_idx * tile_hw + lane) < hw_total
                    x = jnp.where(valid, x, jnp.zeros_like(x))
                tn, ci = x.shape[0], x.shape[1]
                acc[...] += jnp.sum(
                    x.reshape(tn, ci, lanes_per_step, 128),
                    axis=2, dtype=jnp.float32)

        if needs_mask:
            # Only the final (partial) HW tile can over-read: mask there only.
            @pl.when(hw_idx < last)
            def _interior():
                accumulate(False)

            @pl.when(hw_idx == last)
            def _boundary():
                accumulate(True)
        else:
            accumulate(False)

        @pl.when(hw_idx == last)
        def _finalize():
            logits = None
            for acc, w_ref in zip(acc_refs, w_refs):
                pooled = jnp.sum(acc[...], axis=-1)          # single XLU reduce / N-tile
                part = jnp.dot(pooled, w_ref[...],
                               preferred_element_type=jnp.float32)
                logits = part if logits is None else logits + part
            o_ref[...] = (logits * inv_hw + b_ref[...]).astype(out_dtype)

    return kernel


def segformer_classification(xs, weight, bias, *, tile_hw=None, tile_n=None):
    """xs: list of (N, C_i, H, W) arrays (same N, H, W). weight: (num_classes, sum(C_i)).
    bias: (num_classes,). Returns (N, num_classes) float32 logits."""
    xs = list(xs)
    assert len(xs) >= 1
    n, _, h, w = xs[0].shape
    for x in xs:
        assert x.ndim == 4 and x.shape[0] == n and x.shape[2:] == (h, w)
    c_list = [int(x.shape[1]) for x in xs]
    c_total = sum(c_list)
    hw = h * w

    num_classes, input_dim = weight.shape
    assert input_dim == c_total, "input_dim must equal total concatenated channels"

    # ---- batch tile (parallel grid axis; shards across TCs on v7x) ----------
    if tile_n is None:
        if n % 8 == 0 and n >= 16:
            tile_n = 8          # >=2 parallel steps, sublane-aligned output blocks
        else:
            tile_n = n          # small batch: single N step (full-dim output block)
            # TODO(synk): for N < 16 on v7x one TC can idle; sharding the HW
            # reduction across cores would need per-core partial accumulators.
    assert n % tile_n == 0

    itemsize = jnp.dtype(xs[0].dtype).itemsize
    nc_pad = max(128, -(-num_classes // 128) * 128)          # lane-dense output store

    # ---- generation-aware VMEM budget ----------------------------------------
    vmem_cap = _vmem_capacity_bytes()
    vmem_limit = int(min(vmem_cap - 16 * _MIB, (vmem_cap * 7) // 8))

    # Fixed-resident VMEM: weights (counted x2 to stay safe even if single
    # buffering is unavailable), bias, double-buffered output block, f32
    # accumulators, plus compiler slack.
    w_itemsize = jnp.dtype(weight.dtype).itemsize
    fixed = (2 * c_total * nc_pad * w_itemsize
             + 2 * nc_pad * 4
             + 2 * tile_n * nc_pad * 4
             + tile_n * c_total * 128 * 4
             + 2 * _MIB)

    # ---- spatial tile (reduction grid axis): maximize within remaining budget -
    hw_floor = (hw // 128) * 128
    max_tile = hw_floor if hw_floor >= 128 else 128
    if tile_hw is None:
        input_budget = max(vmem_limit - fixed, 2 * _MIB)
        per_hw_col = max(tile_n * c_total * itemsize * 2, 1)  # all chunks, both buffers
        tile_hw = (input_budget // per_hw_col) // 128 * 128
        tile_hw = max(128, min(int(tile_hw), max_tile))
    assert tile_hw % 128 == 0, "tile_hw must be a multiple of 128"
    num_hw_tiles = pl.cdiv(hw, tile_hw)

    # ---- flatten spatial dims onto the lane axis (free reshape, no copy) ----
    xs_flat = [x.reshape(n, c_i, hw) for x, c_i in zip(xs, c_list)]

    # ---- lane-pad num_classes and split the transposed weight per chunk -----
    w_t = jnp.pad(weight.T, ((0, 0), (0, nc_pad - num_classes)))   # (C_total, NC_PAD)
    w_chunks = []
    off = 0
    for c_i in c_list:
        w_chunks.append(w_t[off:off + c_i, :])
        off += c_i
    b2d = jnp.pad(bias.astype(jnp.float32),
                  (0, nc_pad - num_classes)).reshape(1, nc_pad)

    out_dtype = jnp.float32
    kernel = _make_kernel(len(xs), hw, tile_hw, out_dtype)

    x_specs = [pl.BlockSpec((tile_n, c_i, tile_hw), lambda ni, ki: (ni, 0, ki))
               for c_i in c_list]
    out_spec = pl.BlockSpec((tile_n, nc_pad), lambda ni, ki: (ni, 0))
    scratch_shapes = [pltpu.VMEM((tile_n, c_i, 128), jnp.float32) for c_i in c_list]

    bytes_accessed = (sum(int(x.size) for x in xs) * itemsize
                      + int(w_t.size) * w_itemsize
                      + int(b2d.size) * 4 + n * nc_pad * 4)
    cost = pl.CostEstimate(flops=n * c_total * hw + 2 * n * c_total * nc_pad,
                           transcendentals=0,
                           bytes_accessed=bytes_accessed)

    def build_and_call(const_pipeline_mode):
        if const_pipeline_mode is not None:
            w_specs = [pl.BlockSpec((c_i, nc_pad), lambda ni, ki: (0, 0),
                                    pipeline_mode=const_pipeline_mode)
                       for c_i in c_list]
            b_spec = pl.BlockSpec((1, nc_pad), lambda ni, ki: (0, 0),
                                  pipeline_mode=const_pipeline_mode)
        else:
            w_specs = [pl.BlockSpec((c_i, nc_pad), lambda ni, ki: (0, 0))
                       for c_i in c_list]
            b_spec = pl.BlockSpec((1, nc_pad), lambda ni, ki: (0, 0))

        call = pl.pallas_call(
            kernel,
            out_shape=jax.ShapeDtypeStruct((n, nc_pad), out_dtype),
            grid_spec=pltpu.PrefetchScalarGridSpec(
                num_scalar_prefetch=0,
                grid=(n // tile_n, num_hw_tiles),
                in_specs=x_specs + w_specs + [b_spec],
                out_specs=out_spec,
                scratch_shapes=scratch_shapes,
            ),
            compiler_params=pltpu.CompilerParams(
                dimension_semantics=("parallel", "arbitrary"),
                vmem_limit_bytes=vmem_limit,
            ),
            cost_estimate=cost,
        )
        return call(*xs_flat, *w_chunks, b2d)

    # Weights/bias never change across the grid -> request single buffering;
    # fall back to default pipelining if Buffered(1) is rejected.
    try:
        single = pl.Buffered(1)
    except Exception:
        single = None
    try:
        out = build_and_call(single)
    except Exception:
        if single is None:
            raise
        out = build_and_call(None)

    return out[:, :num_classes] if nc_pad != num_classes else out


def _ref_forward(xs, weight, bias):
    x = jnp.concatenate([a.astype(jnp.float32) for a in xs], axis=1)
    pooled = jnp.mean(x, axis=(2, 3))                 # (N, C_total)
    return pooled @ weight.T.astype(jnp.float32) + bias.astype(jnp.float32)


if __name__ == "__main__":
    key = jax.random.PRNGKey(0)
    k1, k2, k3, kw, kb = jax.random.split(key, 5)

    # ---- test 1: two (2, 4, 16, 16) maps, HW=256 split into 2 reduction steps
    N, H, W = 2, 16, 16
    num_classes = 10
    x0 = jax.random.normal(k1, (N, 4, H, W), dtype=jnp.float32)
    x1 = jax.random.normal(k2, (N, 4, H, W), dtype=jnp.float32)
    input_dim = 8

    bound = 1.0 / (input_dim ** 0.5)
    weight = jax.random.uniform(kw, (num_classes, input_dim),
                                minval=-bound, maxval=bound, dtype=jnp.float32)
    bias = jax.random.uniform(kb, (num_classes,),
                              minval=-bound, maxval=bound, dtype=jnp.float32)

    out = jax.block_until_ready(
        segformer_classification([x0, x1], weight, bias, tile_hw=128))
    ref = _ref_forward([x0, x1], weight, bias)
    assert out.shape == (N, num_classes)
    assert jnp.allclose(out, ref, atol=1e-5, rtol=1e-5), "test 1: mismatch vs reference"

    # ---- test 1b: same inputs, auto-sized tile_hw (single reduction step) ----
    out_b = jax.block_until_ready(segformer_classification([x0, x1], weight, bias))
    assert jnp.allclose(out_b, ref, atol=1e-5, rtol=1e-5), "test 1b: mismatch vs reference"

    # ---- test 2: HW (=192) not divisible by tile -> last-tile mask path ------
    x2 = jax.random.normal(k3, (N, 8, 16, 12), dtype=jnp.float32)
    w2 = jax.random.uniform(kw, (num_classes, 8),
                            minval=-0.5, maxval=0.5, dtype=jnp.float32)
    out2 = jax.block_until_ready(
        segformer_classification([x2], w2, bias, tile_hw=128))
    ref2 = _ref_forward([x2], w2, bias)
    assert jnp.allclose(out2, ref2, atol=1e-5, rtol=1e-5), "test 2: mismatch vs reference"

    # ---- test 3: bf16 activations (HBM-bound => half the bytes), f32 accumulation
    x3 = x0.astype(jnp.bfloat16)
    x4 = x1.astype(jnp.bfloat16)
    out3 = jax.block_until_ready(segformer_classification([x3, x4], weight, bias))
    ref3 = _ref_forward([x3, x4], weight, bias)
    assert jnp.allclose(out3, ref3, atol=1e-4, rtol=1e-4), "test 3: mismatch vs reference"

    print("KERNEL_OK")
</pallas_src>

<mosaic_0001>
module attributes {stable_mosaic.version = 11 : i64} {
  func.func @kernel(%arg0: i32, %arg1: i32, %arg2: memref<2x4x128xf32, #tpu.memory_space<vmem>>, %arg3: memref<2x4x128xf32, #tpu.memory_space<vmem>>, %arg4: memref<4x128xf32, #tpu.memory_space<vmem>>, %arg5: memref<4x128xf32, #tpu.memory_space<vmem>>, %arg6: memref<1x128xf32, #tpu.memory_space<vmem>>, %arg7: memref<2x128xf32, #tpu.memory_space<vmem>>, %arg8: memref<2x4x128xf32, #tpu.memory_space<vmem>>, %arg9: memref<2x4x128xf32, #tpu.memory_space<vmem>>) attributes {dimension_semantics = [#tpu.dimension_semantics<parallel>, #tpu.dimension_semantics<arbitrary>], iteration_bounds = array<i64: 1, 2>, scalar_prefetch = 0 : i64, scratch_operands = 2 : i64, tpu.core_type = #tpu.core_type<tc>, window_params = [{transform_indices = @transform_0, window_bounds = array<i64: 2, 4, 128>}, {transform_indices = @transform_1, window_bounds = array<i64: 2, 4, 128>}, {pipeline_mode = #tpu.pipeline_mode<synchronous>, transform_indices = @transform_2, window_bounds = array<i64: 4, 128>}, {pipeline_mode = #tpu.pipeline_mode<synchronous>, transform_indices = @transform_3, window_bounds = array<i64: 4, 128>}, {pipeline_mode = #tpu.pipeline_mode<synchronous>, transform_indices = @transform_4, window_bounds = array<i64: 1, 128>}, {transform_indices = @transform_5, window_bounds = array<i64: 2, 128>}]} {
    %c0_i32 = arith.constant 0 : i32
    %0 = arith.cmpi eq, %arg1, %c0_i32 : i32
    %1 = arith.extui %0 : i1 to i32
    %c0_i32_0 = arith.constant 0 : i32
    %2 = arith.cmpi ne, %1, %c0_i32_0 : i32
    scf.if %2 {
      %cst_20 = arith.constant 0.000000e+00 : f32
      %18 = vector.broadcast %cst_20 : f32 to vector<2x4x128xf32>
      %c0_21 = arith.constant 0 : index
      %c0_22 = arith.constant 0 : index
      %c0_23 = arith.constant 0 : index
      %19 = vector.load %arg8[%c0_21, %c0_22, %c0_23] : memref<2x4x128xf32, #tpu.memory_space<vmem>>, vector<2x4x128xf32>
      tpu.vector_store %arg8[%c0_21, %c0_22, %c0_23], %18 {strides = array<i32>} : memref<2x4x128xf32, #tpu.memory_space<vmem>>, vector<2x4x128xf32>,
      %cst_24 = arith.constant 0.000000e+00 : f32
      %20 = vector.broadcast %cst_24 : f32 to vector<2x4x128xf32>
      %c0_25 = arith.constant 0 : index
      %c0_26 = arith.constant 0 : index
      %c0_27 = arith.constant 0 : index
      %21 = vector.load %arg9[%c0_25, %c0_26, %c0_27] : memref<2x4x128xf32, #tpu.memory_space<vmem>>, vector<2x4x128xf32>
      tpu.vector_store %arg9[%c0_25, %c0_26, %c0_27], %20 {strides = array<i32>} : memref<2x4x128xf32, #tpu.memory_space<vmem>>, vector<2x4x128xf32>,
    } else {
    }
    %c0 = arith.constant 0 : index
    %c0_1 = arith.constant 0 : index
    %c0_2 = arith.constant 0 : index
    %3 = vector.load %arg2[%c0, %c0_1, %c0_2] : memref<2x4x128xf32, #tpu.memory_space<vmem>>, vector<2x4x128xf32>
    %c0_3 = arith.constant 0 : index
    %c0_4 = arith.constant 0 : index
    %c0_5 = arith.constant 0 : index
    %4 = vector.load %arg8[%c0_3, %c0_4, %c0_5] : memref<2x4x128xf32, #tpu.memory_space<vmem>>, vector<2x4x128xf32>
    %5 = vector.shape_cast %3 : vector<2x4x128xf32> to vector<2x4x1x128xf32>
    %cst = arith.constant dense<0.000000e+00> : vector<2x4x128xf32>
    %6 = vector.multi_reduction <add>, %5, %cst [2] : vector<2x4x1x128xf32> to vector<2x4x128xf32>
    %7 = arith.addf %4, %6 : vector<2x4x128xf32>
    %c0_6 = arith.constant 0 : index
    %c0_7 = arith.constant 0 : index
    %c0_8 = arith.constant 0 : index
    %8 = vector.load %arg8[%c0_6, %c0_7, %c0_8] : memref<2x4x128xf32, #tpu.memory_space<vmem>>, vector<2x4x128xf32>
    tpu.vector_store %arg8[%c0_6, %c0_7, %c0_8], %7 {strides = array<i32>} : memref<2x4x128xf32, #tpu.memory_space<vmem>>, vector<2x4x128xf32>,
    %c0_9 = arith.constant 0 : index
    %c0_10 = arith.constant 0 : index
    %c0_11 = arith.constant 0 : index
    %9 = vector.load %arg3[%c0_9, %c0_10, %c0_11] : memref<2x4x128xf32, #tpu.memory_space<vmem>>, vector<2x4x128xf32>
    %c0_12 = arith.constant 0 : index
    %c0_13 = arith.constant 0 : index
    %c0_14 = arith.constant 0 : index
    %10 = vector.load %arg9[%c0_12, %c0_13, %c0_14] : memref<2x4x128xf32, #tpu.memory_space<vmem>>, vector<2x4x128xf32>
    %11 = vector.shape_cast %9 : vector<2x4x128xf32> to vector<2x4x1x128xf32>
    %cst_15 = arith.constant dense<0.000000e+00> : vector<2x4x128xf32>
    %12 = vector.multi_reduction <add>, %11, %cst_15 [2] : vector<2x4x1x128xf32> to vector<2x4x128xf32>
    %13 = arith.addf %10, %12 : vector<2x4x128xf32>
    %c0_16 = arith.constant 0 : index
    %c0_17 = arith.constant 0 : index
    %c0_18 = arith.constant 0 : index
    %14 = vector.load %arg9[%c0_16, %c0_17, %c0_18] : memref<2x4x128xf32, #tpu.memory_space<vmem>>, vector<2x4x128xf32>
    tpu.vector_store %arg9[%c0_16, %c0_17, %c0_18], %13 {strides = array<i32>} : memref<2x4x128xf32, #tpu.memory_space<vmem>>, vector<2x4x128xf32>,
    %c1_i32 = arith.constant 1 : i32
    %15 = arith.cmpi eq, %arg1, %c1_i32 : i32
    %16 = arith.extui %15 : i1 to i32
    %c0_i32_19 = arith.constant 0 : i32
    %17 = arith.cmpi ne, %16, %c0_i32_19 : i32
    scf.if %17 {
      %c0_20 = arith.constant 0 : index
      %c0_21 = arith.constant 0 : index
      %c0_22 = arith.constant 0 : index
      %18 = vector.load %arg8[%c0_20, %c0_21, %c0_22] : memref<2x4x128xf32, #tpu.memory_space<vmem>>, vector<2x4x128xf32>
      %cst_23 = arith.constant dense<0.000000e+00> : vector<2x4xf32>
      %19 = vector.multi_reduction <add>, %18, %cst_23 [2] : vector<2x4x128xf32> to vector<2x4xf32>
      %c0_24 = arith.constant 0 : index
      %c0_25 = arith.constant 0 : index
      %20 = vector.load %arg4[%c0_24, %c0_25] : memref<4x128xf32, #tpu.memory_space<vmem>>, vector<4x128xf32>
      %cst_26 = arith.constant dense<0.000000e+00> : vector<2x128xf32>
      %21 = tpu.matmul %19, %20, %cst_26 {dimension_numbers = #tpu.dot_dimension_numbers<[1], [0], [0], [1], [0, 0, 1, 1], [], []>} : vector<2x4xf32>, vector<4x128xf32>, vector<2x128xf32> -> vector<2x128xf32>
      %c0_27 = arith.constant 0 : index
      %c0_28 = arith.constant 0 : index
      %c0_29 = arith.constant 0 : index
      %22 = vector.load %arg9[%c0_27, %c0_28, %c0_29] : memref<2x4x128xf32, #tpu.memory_space<vmem>>, vector<2x4x128xf32>
      %cst_30 = arith.constant dense<0.000000e+00> : vector<2x4xf32>
      %23 = vector.multi_reduction <add>, %22, %cst_30 [2] : vector<2x4x128xf32> to vector<2x4xf32>
      %c0_31 = arith.constant 0 : index
      %c0_32 = arith.constant 0 : index
      %24 = vector.load %arg5[%c0_31, %c0_32] : memref<4x128xf32, #tpu.memory_space<vmem>>, vector<4x128xf32>
      %cst_33 = arith.constant dense<0.000000e+00> : vector<2x128xf32>
      %25 = tpu.matmul %23, %24, %cst_33 {dimension_numbers = #tpu.dot_dimension_numbers<[1], [0], [0], [1], [0, 0, 1, 1], [], []>} : vector<2x4xf32>, vector<4x128xf32>, vector<2x128xf32> -> vector<2x128xf32>
      %26 = arith.addf %21, %25 : vector<2x128xf32>
      %cst_34 = arith.constant 3.906250e-03 : f32
      %27 = vector.broadcast %cst_34 : f32 to vector<2x128xf32>
      %28 = arith.mulf %26, %27 : vector<2x128xf32>
      %c0_35 = arith.constant 0 : index
      %c0_36 = arith.constant 0 : index
      %29 = vector.load %arg6[%c0_35, %c0_36] : memref<1x128xf32, #tpu.memory_space<vmem>>, vector<1x128xf32>
      %30 = vector.broadcast %29 : vector<1x128xf32> to vector<2x128xf32>
      %31 = arith.addf %28, %30 : vector<2x128xf32>
      %c0_37 = arith.constant 0 : index
      %c0_38 = arith.constant 0 : index
      %32 = vector.load %arg7[%c0_37, %c0_38] : memref<2x128xf32, #tpu.memory_space<vmem>>, vector<2x128xf32>
      tpu.vector_store %arg7[%c0_37, %c0_38], %31 {strides = array<i32>} : memref<2x128xf32, #tpu.memory_space<vmem>>, vector<2x128xf32>,
    } else {
    }
    return
  }
  func.func @transform_0(%arg0: i32, %arg1: i32) -> (i32, i32, i32) {
    %c0_i32 = arith.constant 0 : i32
    %c0_i32_0 = arith.constant 0 : i32
    return %arg0, %c0_i32, %arg1 : i32, i32, i32
  }
  func.func @transform_1(%arg0: i32, %arg1: i32) -> (i32, i32, i32) {
    %c0_i32 = arith.constant 0 : i32
    %c0_i32_0 = arith.constant 0 : i32
    return %arg0, %c0_i32, %arg1 : i32, i32, i32
  }
  func.func @transform_2(%arg0: i32, %arg1: i32) -> (i32, i32) {
    %c0_i32 = arith.constant 0 : i32
    %c0_i32_0 = arith.constant 0 : i32
    %c0_i32_1 = arith.constant 0 : i32
    return %c0_i32, %c0_i32_0 : i32, i32
  }
  func.func @transform_3(%arg0: i32, %arg1: i32) -> (i32, i32) {
    %c0_i32 = arith.constant 0 : i32
    %c0_i32_0 = arith.constant 0 : i32
    %c0_i32_1 = arith.constant 0 : i32
    return %c0_i32, %c0_i32_0 : i32, i32
  }
  func.func @transform_4(%arg0: i32, %arg1: i32) -> (i32, i32) {
    %c0_i32 = arith.constant 0 : i32
    %c0_i32_0 = arith.constant 0 : i32
    %c0_i32_1 = arith.constant 0 : i32
    return %c0_i32, %c0_i32_0 : i32, i32
  }
  func.func @transform_5(%arg0: i32, %arg1: i32) -> (i32, i32) {
    %c0_i32 = arith.constant 0 : i32
    %c0_i32_0 = arith.constant 0 : i32
    return %arg0, %c0_i32 : i32, i32
  }
}

module attributes {stable_mosaic.version = 11 : i64} {
  func.func @kernel(%arg0: i32, %arg1: i32, %arg2: memref<2x4x128xf32, #tpu.memory_space<vmem>>, %arg3: memref<2x4x128xf32, #tpu.memory_space<vmem>>, %arg4: memref<4x128xf32, #tpu.memory_space<vmem>>, %arg5: memref<4x128xf32, #tpu.memory_space<vmem>>, %arg6: memref<1x128xf32, #tpu.memory_space<vmem>>, %arg7: memref<2x128xf32, #tpu.memory_space<vmem>>, %arg8: memref<2x4x128xf32, #tpu.memory_space<vmem>>, %arg9: memref<2x4x128xf32, #tpu.memory_space<vmem>>) attributes {dimension_semantics = [#tpu.dimension_semantics<parallel>, #tpu.dimension_semantics<arbitrary>], iteration_bounds = array<i64: 1, 2>, scalar_prefetch = 0 : i64, scratch_operands = 2 : i64, tpu.core_type = #tpu.core_type<tc>, window_params = [{transform_indices = @transform_0, window_bounds = array<i64: 2, 4, 128>}, {transform_indices = @transform_1, window_bounds = array<i64: 2, 4, 128>}, {pipeline_mode = #tpu.pipeline_mode<synchronous>, transform_indices = @transform_2, window_bounds = array<i64: 4, 128>}, {pipeline_mode = #tpu.pipeline_mode<synchronous>, transform_indices = @transform_3, window_bounds = array<i64: 4, 128>}, {pipeline_mode = #tpu.pipeline_mode<synchronous>, transform_indices = @transform_4, window_bounds = array<i64: 1, 128>}, {transform_indices = @transform_5, window_bounds = array<i64: 2, 128>}]} {
    %c0_i32 = arith.constant 0 : i32
    %0 = arith.cmpi eq, %arg1, %c0_i32 : i32
    %1 = arith.extui %0 : i1 to i32
    %c0_i32_0 = arith.constant 0 : i32
    %2 = arith.cmpi ne, %1, %c0_i32_0 : i32
    scf.if %2 {
      %cst_20 = arith.constant 0.000000e+00 : f32
      %18 = vector.broadcast %cst_20 : f32 to vector<2x4x128xf32>
      %c0_21 = arith.constant 0 : index
      %c0_22 = arith.constant 0 : index
      %c0_23 = arith.constant 0 : index
      %19 = vector.load %arg8[%c0_21, %c0_22, %c0_23] : memref<2x4x128xf32, #tpu.memory_space<vmem>>, vector<2x4x128xf32>
      tpu.vector_store %arg8[%c0_21, %c0_22, %c0_23], %18 {strides = array<i32>} : memref<2x4x128xf32, #tpu.memory_space<vmem>>, vector<2x4x128xf32>,
      %cst_24 = arith.constant 0.000000e+00 : f32
      %20 = vector.broadcast %cst_24 : f32 to vector<2x4x128xf32>
      %c0_25 = arith.constant 0 : index
      %c0_26 = arith.constant 0 : index
      %c0_27 = arith.constant 0 : index
      %21 = vector.load %arg9[%c0_25, %c0_26, %c0_27] : memref<2x4x128xf32, #tpu.memory_space<vmem>>, vector<2x4x128xf32>
      tpu.vector_store %arg9[%c0_25, %c0_26, %c0_27], %20 {strides = array<i32>} : memref<2x4x128xf32, #tpu.memory_space<vmem>>, vector<2x4x128xf32>,
    } else {
    }
    %c0 = arith.constant 0 : index
    %c0_1 = arith.constant 0 : index
    %c0_2 = arith.constant 0 : index
    %3 = vector.load %arg2[%c0, %c0_1, %c0_2] : memref<2x4x128xf32, #tpu.memory_space<vmem>>, vector<2x4x128xf32>
    %c0_3 = arith.constant 0 : index
    %c0_4 = arith.constant 0 : index
    %c0_5 = arith.constant 0 : index
    %4 = vector.load %arg8[%c0_3, %c0_4, %c0_5] : memref<2x4x128xf32, #tpu.memory_space<vmem>>, vector<2x4x128xf32>
    %5 = vector.shape_cast %3 : vector<2x4x128xf32> to vector<2x4x1x128xf32>
    %cst = arith.constant dense<0.000000e+00> : vector<2x4x128xf32>
    %6 = vector.multi_reduction <add>, %5, %cst [2] : vector<2x4x1x128xf32> to vector<2x4x128xf32>
    %7 = arith.addf %4, %6 : vector<2x4x128xf32>
    %c0_6 = arith.constant 0 : index
    %c0_7 = arith.constant 0 : index
    %c0_8 = arith.constant 0 : index
    %8 = vector.load %arg8[%c0_6, %c0_7, %c0_8] : memref<2x4x128xf32, #tpu.memory_space<vmem>>, vector<2x4x128xf32>
    tpu.vector_store %arg8[%c0_6, %c0_7, %c0_8], %7 {strides = array<i32>} : memref<2x4x128xf32, #tpu.memory_space<vmem>>, vector<2x4x128xf32>,
    %c0_9 = arith.constant 0 : index
    %c0_10 = arith.constant 0 : index
    %c0_11 = arith.constant 0 : index
    %9 = vector.load %arg3[%c0_9, %c0_10, %c0_11] : memref<2x4x128xf32, #tpu.memory_space<vmem>>, vector<2x4x128xf32>
    %c0_12 = arith.constant 0 : index
    %c0_13 = arith.constant 0 : index
    %c0_14 = arith.constant 0 : index
    %10 = vector.load %arg9[%c0_12, %c0_13, %c0_14] : memref<2x4x128xf32, #tpu.memory_space<vmem>>, vector<2x4x128xf32>
    %11 = vector.shape_cast %9 : vector<2x4x128xf32> to vector<2x4x1x128xf32>
    %cst_15 = arith.constant dense<0.000000e+00> : vector<2x4x128xf32>
    %12 = vector.multi_reduction <add>, %11, %cst_15 [2] : vector<2x4x1x128xf32> to vector<2x4x128xf32>
    %13 = arith.addf %10, %12 : vector<2x4x128xf32>
    %c0_16 = arith.constant 0 : index
    %c0_17 = arith.constant 0 : index
    %c0_18 = arith.constant 0 : index
    %14 = vector.load %arg9[%c0_16, %c0_17, %c0_18] : memref<2x4x128xf32, #tpu.memory_space<vmem>>, vector<2x4x128xf32>
    tpu.vector_store %arg9[%c0_16, %c0_17, %c0_18], %13 {strides = array<i32>} : memref<2x4x128xf32, #tpu.memory_space<vmem>>, vector<2x4x128xf32>,
    %c1_i32 = arith.constant 1 : i32
    %15 = arith.cmpi eq, %arg1, %c1_i32 : i32
    %16 = arith.extui %15 : i1 to i32
    %c0_i32_19 = arith.constant 0 : i32
    %17 = arith.cmpi ne, %16, %c0_i32_19 : i32
    scf.if %17 {
      %c0_20 = arith.constant 0 : index
      %c0_21 = arith.constant 0 : index
      %c0_22 = arith.constant 0 : index
      %18 = vector.load %arg8[%c0_20, %c0_21, %c0_22] : memref<2x4x128xf32, #tpu.memory_space<vmem>>, vector<2x4x128xf32>
      %cst_23 = arith.constant dense<0.000000e+00> : vector<2x4xf32>
      %19 = vector.multi_reduction <add>, %18, %cst_23 [2] : vector<2x4x128xf32> to vector<2x4xf32>
      %c0_24 = arith.constant 0 : index
      %c0_25 = arith.constant 0 : index
      %20 = vector.load %arg4[%c0_24, %c0_25] : memref<4x128xf32, #tpu.memory_space<vmem>>, vector<4x128xf32>
      %cst_26 = arith.constant dense<0.000000e+00> : vector<2x128xf32>
      %21 = tpu.matmul %19, %20, %cst_26 {dimension_numbers = #tpu.dot_dimension_numbers<[1], [0], [0], [1], [0, 0, 1, 1], [], []>} : vector<2x4xf32>, vector<4x128xf32>, vector<2x128xf32> -> vector<2x128xf32>
      %c0_27 = arith.constant 0 : index
      %c0_28 = arith.constant 0 : index
      %c0_29 = arith.constant 0 : index
      %22 = vector.load %arg9[%c0_27, %c0_28, %c0_29] : memref<2x4x128xf32, #tpu.memory_space<vmem>>, vector<2x4x128xf32>
      %cst_30 = arith.constant dense<0.000000e+00> : vector<2x4xf32>
      %23 = vector.multi_reduction <add>, %22, %cst_30 [2] : vector<2x4x128xf32> to vector<2x4xf32>
      %c0_31 = arith.constant 0 : index
      %c0_32 = arith.constant 0 : index
      %24 = vector.load %arg5[%c0_31, %c0_32] : memref<4x128xf32, #tpu.memory_space<vmem>>, vector<4x128xf32>
      %cst_33 = arith.constant dense<0.000000e+00> : vector<2x128xf32>
      %25 = tpu.matmul %23, %24, %cst_33 {dimension_numbers = #tpu.dot_dimension_numbers<[1], [0], [0], [1], [0, 0, 1, 1], [], []>} : vector<2x4xf32>, vector<4x128xf32>, vector<2x128xf32> -> vector<2x128xf32>
      %26 = arith.addf %21, %25 : vector<2x128xf32>
      %cst_34 = arith.constant 3.906250e-03 : f32
      %27 = vector.broadcast %cst_34 : f32 to vector<2x128xf32>
      %28 = arith.mulf %26, %27 : vector<2x128xf32>
      %c0_35 = arith.constant 0 : index
      %c0_36 = arith.constant 0 : index
      %29 = vector.load %arg6[%c0_35, %c0_36] : memref<1x128xf32, #tpu.memory_space<vmem>>, vector<1x128xf32>
      %30 = vector.broadcast %29 : vector<1x128xf32> to vector<2x128xf32>
      %31 = arith.addf %28, %30 : vector<2x128xf32>
      %c0_37 = arith.constant 0 : index
      %c0_38 = arith.constant 0 : index
      %32 = vector.load %arg7[%c0_37, %c0_38] : memref<2x128xf32, #tpu.memory_space<vmem>>, vector<2x128xf32>
      tpu.vector_store %arg7[%c0_37, %c0_38], %31 {strides = array<i32>} : memref<2x128xf32, #tpu.memory_space<vmem>>, vector<2x128xf32>,
    } else {
    }
    return
  }
  func.func @transform_0(%arg0: i32, %arg1: i32) -> (i32, i32, i32) {
    %c0_i32 = arith.constant 0 : i32
    %c0_i32_0 = arith.constant 0 : i32
    return %arg0, %c0_i32, %arg1 : i32, i32, i32
  }
  func.func @transform_1(%arg0: i32, %arg1: i32) -> (i32, i32, i32) {
    %c0_i32 = arith.constant 0 : i32
    %c0_i32_0 = arith.constant 0 : i32
    return %arg0, %c0_i32, %arg1 : i32, i32, i32
  }
  func.func @transform_2(%arg0: i32, %arg1: i32) -> (i32, i32) {
    %c0_i32 = arith.constant 0 : i32
    %c0_i32_0 = arith.constant 0 : i32
    %c0_i32_1 = arith.constant 0 : i32
    return %c0_i32, %c0_i32_0 : i32, i32
  }
  func.func @transform_3(%arg0: i32, %arg1: i32) -> (i32, i32) {
    %c0_i32 = arith.constant 0 : i32
    %c0_i32_0 = arith.constant 0 : i32
    %c0_i32_1 = arith.constant 0 : i32
    return %c0_i32, %c0_i32_0 : i32, i32
  }
  func.func @transform_4(%arg0: i32, %arg1: i32) -> (i32, i32) {
    %c0_i32 = arith.constant 0 : i32
    %c0_i32_0 = arith.constant 0 : i32
    %c0_i32_1 = arith.constant 0 : i32
    return %c0_i32, %c0_i32_0 : i32, i32
  }
  func.func @transform_5(%arg0: i32, %arg1: i32) -> (i32, i32) {
    %c0_i32 = arith.constant 0 : i32
    %c0_i32_0 = arith.constant 0 : i32
    return %arg0, %c0_i32 : i32, i32
  }
}

</mosaic_0001>

<bundles_post_ra>
// kernel: tpu_custom_call.1
= control target key start
LH: loop header
LB: loop body
LE: loop exit
PB: predicated region body
PF: predicated region fallthrough
CT: control target
= control target key end

     0   :  { %s1091_s0 = inlined_call_operand.hbm [shape: f32[2,4,256], index: 0, kind: input, shape index: {}]   ;;  %s1092_s1 = inlined_call_operand.hbm [shape: f32[2,4,256], index: 1, kind: input, shape index: {}]   ;;  %s1093_s2 = inlined_call_operand.hbm [shape: f32[4,128], index: 2, kind: input, shape index: {}]   ;;  %s1094_s3 = inlined_call_operand.hbm [shape: f32[4,128], index: 3, kind: input, shape index: {}]   ;;  %s1095_s4 = inlined_call_operand.vmem [shape: f32[1,128], index: 4, kind: input, shape index: {}]   ;;  %s1096_s5 = inlined_call_operand.hbm [shape: f32[2,128], index: 5, kind: output, shape index: {}]  }
   0x1   :  { %1098 = sst [smem:[#allocation19_spill]] %s1091_s0 }
   0x2   :  { %1099 = sst [smem:[#allocation20_spill]] %s1093_s2 }
   0x3   :  { %1100 = sst [smem:[#allocation21_spill]] %s1094_s3 }
   0x4   :  { %10 = vsyncpa [#allocation5], 0 }
   0x5   :  { %12 = vsyncpa [#allocation5 + $0x1], 0 }
   0x6   :  { %13 = vsyncpa [#allocation8], 0 }
   0x7   :  { %15 = vsyncpa [#allocation8 + $0x1], 0 }
   0x8   :  { %16 = vsyncpa [#allocation11], 0 }
   0x9   :  { %17 = vsyncpa [#allocation6], 0  ;;  %s941_s18 = smov 0   ;;  %s943_s19 = smov 0  }
   0xa   :  { %s945_s20 = smov 0   ;;  %s947_s21 = smov 0  }
   0xb   :  { %s949_s22 = smov 0   ;;  %s951_s23 = smov 0  }
   0xc LB: > { %s970_s24 = sadd.s32 4294967295, %s902_s23   ;;  %s44_s25 = sadd.s32 1, %s890_s20  ;;  %s902_s23 = sphi %s951_s23, %s23_s23   ;;  %s898_s22 = sphi %s949_s22, %s1114_s22   ;;  %s894_s21 = sphi %s947_s21, %s1113_s21   ;;  %s890_s20 = sphi %s945_s20, %s1112_s20   ;;  %s886_s19 = sphi %s943_s19, %s1111_s19   ;;  %s882_s18 = sphi %s941_s18, %s1110_s18  }
   0xd   : > { %p51_p0 = scmp.ne.s32.totalorder %s890_s20, %s886_s19  ;;  %p52_p1 = scmp.eq.s32.totalorder %s902_s23, 0 }
   0xe   : > { %p57_p2 = scmp.ne.s32.totalorder %s886_s19, %s882_s18  ;;  %p58_p3 = scmp.eq.s32.totalorder %s970_s24, 0 }
   0xf   : > { %p978_p4 = por %p52_p1, %p51_p0  ;;  %p572_p5 = scmp.ge.s32.totalorder %s902_s23, 1 }
  0x10   : > { %p985_p6 = por %p58_p3, %p57_p2  ;;  %p185_p7 = scmp.lt.s32.totalorder %s902_s23, 3 }
  0x11   : > { %s1103_s2 = sld [smem:[#allocation20_spill]]  ;;  %s904_s7 = smov [#allocation9]  }
  0x12   : > { %p993_p8 = pnand %p572_p5, %p185_p7  ;;  %s199_s8 = sshll.u32 %s904_s7, 4  ;;  %s200_s8 = int_to_ptr.vmem [resolvable:$true] %s199_s8 }
  0x13   : > { %p627_p10 = scmp.lt.s32.totalorder %s902_s23, 2  ;;  %s1105_s3 = sld [smem:[#allocation21_spill]] }
  0x14   : > { %p611_p9 = pneg %p993_p8  ;;  %s905_s13 = smov [#allocation10]  }
  0x15   : > { %p1007_p12 = pnand %p627_p10, %p978_p4  ;;  %s211_s14 = sshll.u32 %s905_s13, 4  ;;  %s212_s14 = int_to_ptr.vmem [resolvable:$true] %s211_s14 }
  0x16   : > { %p612_p11 = pnand %p611_p9, %p58_p3  ;;  %s225_s15 = sand.u32 1, %s890_s20  }
  0x17   : > { %s197_s30 = sshll.u32 %s1103_s2, 4  ;;  %s32_s16 = sadd.s32 1, %s898_s22  ;;  %s198_s30 = int_to_ptr.hbm [resolvable:$true] %s197_s30 }
  0x18   : > { %614 = dma.hbm_to_vmem [thread:$0]  (!%p612_p11), %s198_s30, 64, %s200_s8, [#allocation8]  }
  0x19   : > { %s209_s11 = sshll.u32 %s1105_s3, 4  ;;  %p33_p13 = scmp.ge.s32.totalorder %s32_s16, 2  ;;  %s210_s11 = int_to_ptr.hbm [resolvable:$true] %s209_s11 }
  0x1a   : > { %617 = dma.hbm_to_vmem [thread:$0]  (!%p612_p11), %s210_s11, 64, %s212_s14, [#allocation11]  }
  0x1b   : > { %s576_s17 = sshll.u32 %s225_s15, 3  ;;  %s577_s18 = sshll.u32 %s898_s22, 2 }
  0x1c   : > { %s1116_s16 = smov (%p33_p13, %s32_s16), 0  ;;  %s1108_s0 = sld [smem:[#allocation19_spill]] }
  0x1d   : > { %1107 = sst [smem:[#allocation18_spill]] %s1116_s16  ;;  %s229_s30 = scalar_lea.vmem [#allocation4], %s576_s17 }
  0x1e   : > { %s239_s7 = sshll.u32 %s229_s30, 4  ;;  %s40_s8 = ssub.s32 %s898_s22, %s1116_s16  ;;  %s240_s7 = int_to_ptr.vmem [resolvable:$true] %s239_s7 }
  0x1f   : > { %p42_p0 = scmp.eq.s32.totalorder %s40_s8, 0  ;;  %s226_s11 = scalar_lea.sflag [#allocation5], %s225_s15 }
  0x20   : > { %s906_s13 = smov 128   ;;  %s907_s14 = smov 64  }
  0x21   : > { %s1024_s10 = scalar_select %p42_p0, %s890_s20, %s44_s25  }
  0x22   : > { %s236_s29 = scalar_lea.hbm %s1108_s0, %s577_s18  ;;  %s908_s2 = smov 4  }
  0x23   : > { %s237_s9 = sshll.u32 %s236_s29, 4  ;;  %s260_s30 = scalar_lea.hbm %s1092_s1, %s577_s18  ;;  %s238_s9 = int_to_ptr.hbm [resolvable:$true] %s237_s9 }
  0x24   : > { %621 = dma.hbm_to_vmem [thread:$0]  (!%p1007_p12), %s238_s9, 128, %s240_s7, %s226_s11, %s906_s13, %s907_s14, %s908_s2  }
  0x25   : > { %s261_s0 = sshll.u32 %s260_s30, 4  ;;  %s253_s29 = scalar_lea.vmem [#allocation7], %s576_s17  ;;  %s262_s0 = int_to_ptr.hbm [resolvable:$true] %s261_s0 }
  0x26   : > { %s263_s3 = sshll.u32 %s253_s29, 4  ;;  %s249_s8 = sand.u32 1, %s902_s23   ;;  %s264_s3 = int_to_ptr.vmem [resolvable:$true] %s263_s3 }
  0x27   : > { %s250_s16 = scalar_lea.sflag [#allocation8], %s249_s8  ;;  %275 = sbr.rel (%p993_p8) target bundleno = 347 (0x15b), region = 40 }
  0x28   : > { %624 = dma.hbm_to_vmem [thread:$0]  (!%p1007_p12), %s262_s0, 128, %s264_s3, %s250_s16, %s906_s13, %s907_s14, %s908_s2  }
  0x29   : > { %s277_s25 = sand.u32 (!%p993_p8), 1, %s886_s19  }
  0x2a   : > { %s1037_s15 = sshll.u32 (!%p993_p8), %s277_s25, 3  ;;  %s278_s7 = scalar_lea.sflag (!%p993_p8), [#allocation5], %s277_s25 }
  0x2b   : > { %s281_s18 = scalar_lea.vmem (!%p993_p8), [#allocation4], %s1037_s15 }
  0x2c   : > { %861 = dma.done.wait (%p985_p6), %s278_s7, 128  }
  0x2d   : > { %863 = vsyncadd (%p985_p6), %s278_s7, 4294967168  ;;  %s287_s0 = sand.u32 1, %s970_s24   ;;  %s291_s3 = scalar_lea.vmem [#allocation7], %s1037_s15 }
  0x2e   : > { %s288_s2 = scalar_lea.sflag [#allocation8], %s287_s0 }
  0x2f   : > { %865 = dma.done.wait (%p985_p6), %s288_s2, 128  }
  0x30   : > { %867 = vsyncadd (%p985_p6), %s288_s2, 4294967168 }
  0x31   : > { %869 = dma.done.wait (%p58_p3), [#allocation8], 64  }
  0x32   : > { %871 = vsyncadd (%p58_p3), [#allocation8], 4294967232 }
  0x33   : > { %873 = dma.done.wait (%p58_p3), [#allocation11], 64  }
  0x34   : > { %875 = vsyncadd (%p58_p3), [#allocation11], 4294967232  ;;  %p585_p1 = scmp.ne.s32.totalorder %s894_s21, 0 }
  0x36   : > { %334 = sbr.rel (%p585_p1) target bundleno = 64 (0x40), region = 60 }
  0x3b   : > { %v909_v0 = vmov 0.0  }
  0x3c   : > { %335 = vst [vmem:[#allocation2] sm:$0xf] %v909_v0 }
  0x3d   : > { %336 = vst [vmem:[#allocation2 + $0x4] sm:$0xf] %v909_v0 }
  0x3e   : > { %337 = vst [vmem:[#allocation3] sm:$0xf] %v909_v0 }
  0x3f   : > { %338 = vst [vmem:[#allocation3 + $0x4] sm:$0xf] %v909_v0 }
  0x40 PF: > { %v339_v1 = vld [vmem:[%s281_s18] sm:$0xf]  ;;  %v340_v3 = vld [vmem:[%s281_s18 + $0x4] sm:$0xf]  ;;  %v349_v6 = vld [vmem:[%s291_s3] sm:$0xf] }
  0x41   : > { %v350_v10 = vld [vmem:[%s291_s3 + $0x4] sm:$0xf]  ;;  %p586_p2 = scmp.ne.s32.totalorder %s894_s21, 1 }
  0x43   : > { %v341_v2 = vld [vmem:[#allocation2] sm:$0xf] }
  0x44   : > { %v345_v4 = vadd.f32 %v341_v2, %v339_v1  ;;  %v342_v5 = vld [vmem:[#allocation2 + $0x4] sm:$0xf] }
  0x45   : > { %v351_v7 = vld [vmem:[#allocation3] sm:$0xf]  ;;  %v346_v8 = vadd.f32 %v342_v5, %v340_v3  ;;  %362 = sbr.rel (%p586_p2) target bundleno = 341 (0x155), region = 64 }
  0x46   : > { %v355_v9 = vadd.f32 %v351_v7, %v349_v6  ;;  %v352_v11 = vld [vmem:[#allocation3 + $0x4] sm:$0xf]  ;;  %347 = vst [vmem:[#allocation2] sm:$0xf] %v345_v4 }
  0x47   : > { %v356_v12 = vadd.f32 %v352_v11, %v350_v10  ;;  %348 = vst [vmem:[#allocation2 + $0x4] sm:$0xf] %v346_v8 }
  0x48   : > { %357 = vst [vmem:[#allocation3] sm:$0xf] %v355_v9 }
  0x49   : > { %358 = vst [vmem:[#allocation3 + $0x4] sm:$0xf] %v356_v12 }
  0x4a   : > { %vm365_vm0 = vcmask 1043456   ;;  %v381_v21 = vld [vmem:[#allocation10] sm:$0xf]  ;;  %v372_v22 = vld [vmem:[#allocation9] sm:$0xf]  ;;  %v384_v25 = vlaneseq  ;;  %vm388_vm1 = vcmask 1041409  }
  0x4b   : > { %587 = vmatpush.msk.msra.mxu0 %vm365_vm0, %v381_v21  ;;  %589 = vmatpush.msk.msra.mxu1 %vm365_vm0, %v372_v22  ;;  %vm390_vm2 = vcmask 31744   ;;  %v687_v38 = vld [vmem:[%s1095_s4] ss:$0 sm:$0xff] }
  0x4c   : > { %v385_v26 = vand.u32 127, %v384_v25 }
  0x4d   : > { %v363_v14 = vld [vmem:[#allocation2] sm:$0xf] }
  0x4e   : > { %v366_v16 = vsel %vm365_vm0, %v363_v14, 0.0  ;;  %v364_v18 = vld [vmem:[#allocation2 + $0x4] sm:$0xf] }
  0x4f   : > { %v373_v13 = vld [vmem:[#allocation3] sm:$0xf]  ;;  %367 = vadd.xlane.f32.xlu0 %v366_v16  ;;  %v369_v20 = vsel %vm365_vm0, %v364_v18, 0.0 }
  0x50   : > { %v375_v15 = vsel %vm365_vm0, %v373_v13, 0.0  ;;  %v374_v17 = vld [vmem:[#allocation3 + $0x4] sm:$0xf] }
  0x51   : > { %376 = vadd.xlane.f32.xlu1 %v375_v15  ;;  %v378_v19 = vsel %vm365_vm0, %v374_v17, 0.0 }
  0x57   : > { %370 = vadd.xlane.f32.xlu0 %v369_v20 }
  0x59   : > { %379 = vadd.xlane.f32.xlu1 %v378_v19 }
  0xc2   : > { %v368_v24 = vpop.xlane.xlu0 %367 }
  0xc3   : > { %v418_v30 = vperm.slane %v368_v24, %v385_v26 }
  0xc4   : > { %v377_v23 = vpop.xlane.xlu1 %376 }
  0xc5   : > { %v386_v29 = vperm.slane %v377_v23, %v385_v26 }
  0xca   : > { %v371_v28 = vpop.xlane.xlu0 %370 }
  0xcb   : > { %v419_v32 = vperm.slane %v371_v28, %v385_v26 }
  0xcc   : > { %v380_v27 = vpop.xlane.xlu1 %379 }
  0xcd   : > { %v387_v31 = vperm.slane %v380_v27, %v385_v26  ;;  %v420_v34 = vsel %vm388_vm1, %v419_v32, %v418_v30 }
  0xce   : > { %590 = vmatmul.msk.f32.vlgmr.msra.gmra.mxu1 %vm390_vm2, %v420_v34 }
  0xcf   : > { %v389_v33 = vsel %vm388_vm1, %v387_v31, %v386_v29 }
  0xd0   : > { %588 = vmatmul.msk.f32.vlgmr.msra.gmra.mxu0 %vm390_vm2, %v389_v33 }
 0x14b   : > { %v443_v36 = vpop.f32.mrf.mxu1 }
 0x14d   : > { %v413_v35 = vpop.f32.mrf.mxu0 }
 0x14e   : > { %v444_v37 = vadd.f32 %v443_v36, %v413_v35 }
 0x150   : > { %v446_v39 = vmul.f32 0.00390625, %v444_v37 }
 0x152   : > { %v451_v40 = vadd.f32 %v687_v38, %v446_v39 }
 0x154   : > { %452 = vst [vmem:[#allocation12] sm:$0x3] %v451_v40 }
 0x155 PF: > { %p630_p3 = scmp.eq.s32.totalorder %s970_s24, 1  ;;  %s463_s16 = sshll.u32 %s1096_s5, 4  ;;  %s464_s16 = int_to_ptr.hbm [resolvable:$true] %s463_s16 }
 0x156   : > { %s910_s17 = smov [#allocation12]  }
 0x157   : > { %s461_s9 = sshll.u32 %s910_s17, 4  ;;  %s462_s9 = int_to_ptr.vmem [resolvable:$true] %s461_s9 }
 0x158   : > { %608 = dma.vmem_to_hbm [thread:$0]  (%p630_p3), %s462_s9, 32, %s464_s16, [#allocation6]  }
 0x159   : > { %877 = dma.done.wait (%p630_p3), [#allocation6], 32  }
 0x15a   : > { %879 = vsyncadd (%p630_p3), [#allocation6], 4294967264 }
 0x15b PF: > { %s23_s23 = sadd.s32 1, %s902_s23   ;;  %s1109_s24 = sld [smem:[#allocation18_spill]] }
 0x15c   : > { %p20_p4 = scmp.ge.s32.totalorder %s23_s23, 4   ;;  %s1110_s18 = smov %s886_s19 }
 0x15d   : > { %s1111_s19 = smov %s890_s20  ;;  %s1112_s20 = smov %s1024_s10 }
 0x15e   : > { %s1113_s21 = smov %s898_s22  ;;  %22 = sbr.rel (!%p20_p4) target bundleno = 12 (0xc), region = 107 }
 0x161   : > { %s1114_s22 = smov %s1109_s24 }
 0x163   :  { %477 = vsyncpa [#allocation5], 1 }
 0x164   :  { %479 = vsyncpa [#allocation5 + $0x1], 1 }
 0x165   :  { %480 = vsyncpa [#allocation8], 1 }
 0x166   :  { %482 = vsyncpa [#allocation8 + $0x1], 1 }
 0x167   :  { %483 = vsyncpa [#allocation11], 1 }
 0x168   :  { %484 = vsyncpa [#allocation6], 1 }
 0x169   :  { %486 = vsyncpa [#allocation6 + $0x1], 1 }

// kernel: tpu_custom_call.1
= control target key start
LH: loop header
LB: loop body
LE: loop exit
PB: predicated region body
PF: predicated region fallthrough
CT: control target
= control target key end

     0   :  { %s1091_s0 = inlined_call_operand.hbm [shape: f32[2,4,256], index: 0, kind: input, shape index: {}]   ;;  %s1092_s1 = inlined_call_operand.hbm [shape: f32[2,4,256], index: 1, kind: input, shape index: {}]   ;;  %s1093_s2 = inlined_call_operand.hbm [shape: f32[4,128], index: 2, kind: input, shape index: {}]   ;;  %s1094_s3 = inlined_call_operand.hbm [shape: f32[4,128], index: 3, kind: input, shape index: {}]   ;;  %s1095_s4 = inlined_call_operand.vmem [shape: f32[1,128], index: 4, kind: input, shape index: {}]   ;;  %s1096_s5 = inlined_call_operand.hbm [shape: f32[2,128], index: 5, kind: output, shape index: {}]  }
   0x1   :  { %1098 = sst [smem:[#allocation19_spill]] %s1091_s0 }
   0x2   :  { %1099 = sst [smem:[#allocation20_spill]] %s1093_s2 }
   0x3   :  { %1100 = sst [smem:[#allocation21_spill]] %s1094_s3 }
   0x4   :  { %10 = vsyncpa [#allocation5], 0 }
   0x5   :  { %12 = vsyncpa [#allocation5 + $0x1], 0 }
   0x6   :  { %13 = vsyncpa [#allocation8], 0 }
   0x7   :  { %15 = vsyncpa [#allocation8 + $0x1], 0 }
   0x8   :  { %16 = vsyncpa [#allocation11], 0 }
   0x9   :  { %17 = vsyncpa [#allocation6], 0  ;;  %s941_s18 = smov 0   ;;  %s943_s19 = smov 0  }
   0xa   :  { %s945_s20 = smov 0   ;;  %s947_s21 = smov 0  }
   0xb   :  { %s949_s22 = smov 0   ;;  %s951_s23 = smov 0  }
   0xc LB: > { %s970_s24 = sadd.s32 4294967295, %s902_s23   ;;  %s44_s25 = sadd.s32 1, %s890_s20  ;;  %s902_s23 = sphi %s951_s23, %s23_s23   ;;  %s898_s22 = sphi %s949_s22, %s1114_s22   ;;  %s894_s21 = sphi %s947_s21, %s1113_s21   ;;  %s890_s20 = sphi %s945_s20, %s1112_s20   ;;  %s886_s19 = sphi %s943_s19, %s1111_s19   ;;  %s882_s18 = sphi %s941_s18, %s1110_s18  }
   0xd   : > { %p51_p0 = scmp.ne.s32.totalorder %s890_s20, %s886_s19  ;;  %p52_p1 = scmp.eq.s32.totalorder %s902_s23, 0 }
   0xe   : > { %p57_p2 = scmp.ne.s32.totalorder %s886_s19, %s882_s18  ;;  %p58_p3 = scmp.eq.s32.totalorder %s970_s24, 0 }
   0xf   : > { %p978_p4 = por %p52_p1, %p51_p0  ;;  %p572_p5 = scmp.ge.s32.totalorder %s902_s23, 1 }
  0x10   : > { %p985_p6 = por %p58_p3, %p57_p2  ;;  %p185_p7 = scmp.lt.s32.totalorder %s902_s23, 3 }
  0x11   : > { %s1103_s2 = sld [smem:[#allocation20_spill]]  ;;  %s904_s7 = smov [#allocation9]  }
  0x12   : > { %p993_p8 = pnand %p572_p5, %p185_p7  ;;  %s199_s8 = sshll.u32 %s904_s7, 4  ;;  %s200_s8 = int_to_ptr.vmem [resolvable:$true] %s199_s8 }
  0x13   : > { %p627_p10 = scmp.lt.s32.totalorder %s902_s23, 2  ;;  %s1105_s3 = sld [smem:[#allocation21_spill]] }
  0x14   : > { %p611_p9 = pneg %p993_p8  ;;  %s905_s13 = smov [#allocation10]  }
  0x15   : > { %p1007_p12 = pnand %p627_p10, %p978_p4  ;;  %s211_s14 = sshll.u32 %s905_s13, 4  ;;  %s212_s14 = int_to_ptr.vmem [resolvable:$true] %s211_s14 }
  0x16   : > { %p612_p11 = pnand %p611_p9, %p58_p3  ;;  %s225_s15 = sand.u32 1, %s890_s20  }
  0x17   : > { %s197_s30 = sshll.u32 %s1103_s2, 4  ;;  %s32_s16 = sadd.s32 1, %s898_s22  ;;  %s198_s30 = int_to_ptr.hbm [resolvable:$true] %s197_s30 }
  0x18   : > { %614 = dma.hbm_to_vmem [thread:$0]  (!%p612_p11), %s198_s30, 64, %s200_s8, [#allocation8]  }
  0x19   : > { %s209_s11 = sshll.u32 %s1105_s3, 4  ;;  %p33_p13 = scmp.ge.s32.totalorder %s32_s16, 2  ;;  %s210_s11 = int_to_ptr.hbm [resolvable:$true] %s209_s11 }
  0x1a   : > { %617 = dma.hbm_to_vmem [thread:$0]  (!%p612_p11), %s210_s11, 64, %s212_s14, [#allocation11]  }
  0x1b   : > { %s576_s17 = sshll.u32 %s225_s15, 3  ;;  %s577_s18 = sshll.u32 %s898_s22, 2 }
  0x1c   : > { %s1116_s16 = smov (%p33_p13, %s32_s16), 0  ;;  %s1108_s0 = sld [smem:[#allocation19_spill]] }
  0x1d   : > { %1107 = sst [smem:[#allocation18_spill]] %s1116_s16  ;;  %s229_s30 = scalar_lea.vmem [#allocation4], %s576_s17 }
  0x1e   : > { %s239_s7 = sshll.u32 %s229_s30, 4  ;;  %s40_s8 = ssub.s32 %s898_s22, %s1116_s16  ;;  %s240_s7 = int_to_ptr.vmem [resolvable:$true] %s239_s7 }
  0x1f   : > { %p42_p0 = scmp.eq.s32.totalorder %s40_s8, 0  ;;  %s226_s11 = scalar_lea.sflag [#allocation5], %s225_s15 }
  0x20   : > { %s906_s13 = smov 128   ;;  %s907_s14 = smov 64  }
  0x21   : > { %s1024_s10 = scalar_select %p42_p0, %s890_s20, %s44_s25  }
  0x22   : > { %s236_s29 = scalar_lea.hbm %s1108_s0, %s577_s18  ;;  %s908_s2 = smov 4  }
  0x23   : > { %s237_s9 = sshll.u32 %s236_s29, 4  ;;  %s260_s30 = scalar_lea.hbm %s1092_s1, %s577_s18  ;;  %s238_s9 = int_to_ptr.hbm [resolvable:$true] %s237_s9 }
  0x24   : > { %621 = dma.hbm_to_vmem [thread:$0]  (!%p1007_p12), %s238_s9, 128, %s240_s7, %s226_s11, %s906_s13, %s907_s14, %s908_s2  }
  0x25   : > { %s261_s0 = sshll.u32 %s260_s30, 4  ;;  %s253_s29 = scalar_lea.vmem [#allocation7], %s576_s17  ;;  %s262_s0 = int_to_ptr.hbm [resolvable:$true] %s261_s0 }
  0x26   : > { %s263_s3 = sshll.u32 %s253_s29, 4  ;;  %s249_s8 = sand.u32 1, %s902_s23   ;;  %s264_s3 = int_to_ptr.vmem [resolvable:$true] %s263_s3 }
  0x27   : > { %s250_s16 = scalar_lea.sflag [#allocation8], %s249_s8  ;;  %275 = sbr.rel (%p993_p8) target bundleno = 347 (0x15b), region = 40 }
  0x28   : > { %624 = dma.hbm_to_vmem [thread:$0]  (!%p1007_p12), %s262_s0, 128, %s264_s3, %s250_s16, %s906_s13, %s907_s14, %s908_s2  }
  0x29   : > { %s277_s25 = sand.u32 (!%p993_p8), 1, %s886_s19  }
  0x2a   : > { %s1037_s15 = sshll.u32 (!%p993_p8), %s277_s25, 3  ;;  %s278_s7 = scalar_lea.sflag (!%p993_p8), [#allocation5], %s277_s25 }
  0x2b   : > { %s281_s18 = scalar_lea.vmem (!%p993_p8), [#allocation4], %s1037_s15 }
  0x2c   : > { %861 = dma.done.wait (%p985_p6), %s278_s7, 128  }
  0x2d   : > { %863 = vsyncadd (%p985_p6), %s278_s7, 4294967168  ;;  %s287_s0 = sand.u32 1, %s970_s24   ;;  %s291_s3 = scalar_lea.vmem [#allocation7], %s1037_s15 }
  0x2e   : > { %s288_s2 = scalar_lea.sflag [#allocation8], %s287_s0 }
  0x2f   : > { %865 = dma.done.wait (%p985_p6), %s288_s2, 128  }
  0x30   : > { %867 = vsyncadd (%p985_p6), %s288_s2, 4294967168 }
  0x31   : > { %869 = dma.done.wait (%p58_p3), [#allocation8], 64  }
  0x32   : > { %871 = vsyncadd (%p58_p3), [#allocation8], 4294967232 }
  0x33   : > { %873 = dma.done.wait (%p58_p3), [#allocation11], 64  }
  0x34   : > { %875 = vsyncadd (%p58_p3), [#allocation11], 4294967232  ;;  %p585_p1 = scmp.ne.s32.totalorder %s894_s21, 0 }
  0x36   : > { %334 = sbr.rel (%p585_p1) target bundleno = 64 (0x40), region = 60 }
  0x3b   : > { %v909_v0 = vmov 0.0  }
  0x3c   : > { %335 = vst [vmem:[#allocation2] sm:$0xf] %v909_v0 }
  0x3d   : > { %336 = vst [vmem:[#allocation2 + $0x4] sm:$0xf] %v909_v0 }
  0x3e   : > { %337 = vst [vmem:[#allocation3] sm:$0xf] %v909_v0 }
  0x3f   : > { %338 = vst [vmem:[#allocation3 + $0x4] sm:$0xf] %v909_v0 }
  0x40 PF: > { %v339_v1 = vld [vmem:[%s281_s18] sm:$0xf]  ;;  %v340_v3 = vld [vmem:[%s281_s18 + $0x4] sm:$0xf]  ;;  %v349_v6 = vld [vmem:[%s291_s3] sm:$0xf] }
  0x41   : > { %v350_v10 = vld [vmem:[%s291_s3 + $0x4] sm:$0xf]  ;;  %p586_p2 = scmp.ne.s32.totalorder %s894_s21, 1 }
  0x43   : > { %v341_v2 = vld [vmem:[#allocation2] sm:$0xf] }
  0x44   : > { %v345_v4 = vadd.f32 %v341_v2, %v339_v1  ;;  %v342_v5 = vld [vmem:[#allocation2 + $0x4] sm:$0xf] }
  0x45   : > { %v351_v7 = vld [vmem:[#allocation3] sm:$0xf]  ;;  %v346_v8 = vadd.f32 %v342_v5, %v340_v3  ;;  %362 = sbr.rel (%p586_p2) target bundleno = 341 (0x155), region = 64 }
  0x46   : > { %v355_v9 = vadd.f32 %v351_v7, %v349_v6  ;;  %v352_v11 = vld [vmem:[#allocation3 + $0x4] sm:$0xf]  ;;  %347 = vst [vmem:[#allocation2] sm:$0xf] %v345_v4 }
  0x47   : > { %v356_v12 = vadd.f32 %v352_v11, %v350_v10  ;;  %348 = vst [vmem:[#allocation2 + $0x4] sm:$0xf] %v346_v8 }
  0x48   : > { %357 = vst [vmem:[#allocation3] sm:$0xf] %v355_v9 }
  0x49   : > { %358 = vst [vmem:[#allocation3 + $0x4] sm:$0xf] %v356_v12 }
  0x4a   : > { %vm365_vm0 = vcmask 1043456   ;;  %v381_v21 = vld [vmem:[#allocation10] sm:$0xf]  ;;  %v372_v22 = vld [vmem:[#allocation9] sm:$0xf]  ;;  %v384_v25 = vlaneseq  ;;  %vm388_vm1 = vcmask 1041409  }
  0x4b   : > { %587 = vmatpush.msk.msra.mxu0 %vm365_vm0, %v381_v21  ;;  %589 = vmatpush.msk.msra.mxu1 %vm365_vm0, %v372_v22  ;;  %vm390_vm2 = vcmask 31744   ;;  %v687_v38 = vld [vmem:[%s1095_s4] ss:$0 sm:$0xff] }
  0x4c   : > { %v385_v26 = vand.u32 127, %v384_v25 }
  0x4d   : > { %v363_v14 = vld [vmem:[#allocation2] sm:$0xf] }
  0x4e   : > { %v366_v16 = vsel %vm365_vm0, %v363_v14, 0.0  ;;  %v364_v18 = vld [vmem:[#allocation2 + $0x4] sm:$0xf] }
  0x4f   : > { %v373_v13 = vld [vmem:[#allocation3] sm:$0xf]  ;;  %367 = vadd.xlane.f32.xlu0 %v366_v16  ;;  %v369_v20 = vsel %vm365_vm0, %v364_v18, 0.0 }
  0x50   : > { %v375_v15 = vsel %vm365_vm0, %v373_v13, 0.0  ;;  %v374_v17 = vld [vmem:[#allocation3 + $0x4] sm:$0xf] }
  0x51   : > { %376 = vadd.xlane.f32.xlu1 %v375_v15  ;;  %v378_v19 = vsel %vm365_vm0, %v374_v17, 0.0 }
  0x57   : > { %370 = vadd.xlane.f32.xlu0 %v369_v20 }
  0x59   : > { %379 = vadd.xlane.f32.xlu1 %v378_v19 }
  0xc2   : > { %v368_v24 = vpop.xlane.xlu0 %367 }
  0xc3   : > { %v418_v30 = vperm.slane %v368_v24, %v385_v26 }
  0xc4   : > { %v377_v23 = vpop.xlane.xlu1 %376 }
  0xc5   : > { %v386_v29 = vperm.slane %v377_v23, %v385_v26 }
  0xca   : > { %v371_v28 = vpop.xlane.xlu0 %370 }
  0xcb   : > { %v419_v32 = vperm.slane %v371_v28, %v385_v26 }
  0xcc   : > { %v380_v27 = vpop.xlane.xlu1 %379 }
  0xcd   : > { %v387_v31 = vperm.slane %v380_v27, %v385_v26  ;;  %v420_v34 = vsel %vm388_vm1, %v419_v32, %v418_v30 }
  0xce   : > { %590 = vmatmul.msk.f32.vlgmr.msra.gmra.mxu1 %vm390_vm2, %v420_v34 }
  0xcf   : > { %v389_v33 = vsel %vm388_vm1, %v387_v31, %v386_v29 }
  0xd0   : > { %588 = vmatmul.msk.f32.vlgmr.msra.gmra.mxu0 %vm390_vm2, %v389_v33 }
 0x14b   : > { %v443_v36 = vpop.f32.mrf.mxu1 }
 0x14d   : > { %v413_v35 = vpop.f32.mrf.mxu0 }
 0x14e   : > { %v444_v37 = vadd.f32 %v443_v36, %v413_v35 }
 0x150   : > { %v446_v39 = vmul.f32 0.00390625, %v444_v37 }
 0x152   : > { %v451_v40 = vadd.f32 %v687_v38, %v446_v39 }
 0x154   : > { %452 = vst [vmem:[#allocation12] sm:$0x3] %v451_v40 }
 0x155 PF: > { %p630_p3 = scmp.eq.s32.totalorder %s970_s24, 1  ;;  %s463_s16 = sshll.u32 %s1096_s5, 4  ;;  %s464_s16 = int_to_ptr.hbm [resolvable:$true] %s463_s16 }
 0x156   : > { %s910_s17 = smov [#allocation12]  }
 0x157   : > { %s461_s9 = sshll.u32 %s910_s17, 4  ;;  %s462_s9 = int_to_ptr.vmem [resolvable:$true] %s461_s9 }
 0x158   : > { %608 = dma.vmem_to_hbm [thread:$0]  (%p630_p3), %s462_s9, 32, %s464_s16, [#allocation6]  }
 0x159   : > { %877 = dma.done.wait (%p630_p3), [#allocation6], 32  }
 0x15a   : > { %879 = vsyncadd (%p630_p3), [#allocation6], 4294967264 }
 0x15b PF: > { %s23_s23 = sadd.s32 1, %s902_s23   ;;  %s1109_s24 = sld [smem:[#allocation18_spill]] }
 0x15c   : > { %p20_p4 = scmp.ge.s32.totalorder %s23_s23, 4   ;;  %s1110_s18 = smov %s886_s19 }
 0x15d   : > { %s1111_s19 = smov %s890_s20  ;;  %s1112_s20 = smov %s1024_s10 }
 0x15e   : > { %s1113_s21 = smov %s898_s22  ;;  %22 = sbr.rel (!%p20_p4) target bundleno = 12 (0xc), region = 107 }
 0x161   : > { %s1114_s22 = smov %s1109_s24 }
 0x163   :  { %477 = vsyncpa [#allocation5], 1 }
 0x164   :  { %479 = vsyncpa [#allocation5 + $0x1], 1 }
 0x165   :  { %480 = vsyncpa [#allocation8], 1 }
 0x166   :  { %482 = vsyncpa [#allocation8 + $0x1], 1 }
 0x167   :  { %483 = vsyncpa [#allocation11], 1 }
 0x168   :  { %484 = vsyncpa [#allocation6], 1 }
 0x169   :  { %486 = vsyncpa [#allocation6 + $0x1], 1 }

</bundles_post_ra>
